<compile_context>
chip_gen: v6e
topology: v6e:2x2x1
jax: 0.10.0
libtpu: 0.0.40
codegen_flags: <defaults>
</compile_context>

<pallas_src>
import functools
import math

import jax
import jax.numpy as jnp
from jax import lax
from jax.experimental import pallas as pl
from jax.experimental.pallas import tpu as pltpu


def _row_l2_normalize(x, eps=1e-12):
    # F.normalize(x, dim=-1): x / max(||x||, eps) == x * rsqrt(max(||x||^2, eps^2))
    ss = jnp.sum(x * x, axis=-1, keepdims=True)
    return x * lax.rsqrt(jnp.maximum(ss, eps * eps))


def arcface_kernel(
    # inputs
    t_ref,        # SMEM (1,)          f32  updated running buffer t
    tgt_ref,      # VMEM (N, 1)        i32  class targets
    fd_ref,       # VMEM (N, D)        bf16 dropout-applied normalized features
    ctm_ref,      # VMEM (N, 1)        f32  cos(theta + m) per row
    ftl_ref,      # VMEM (N, 1)        f32  final target logit per row
    w_ref,        # VMEM (D, tile_c)   bf16 streamed transposed weight tile
    # outputs
    loss_ref,     # SMEM (1,)          f32
    # scratch
    m_ref,        # VMEM (N, 1)        f32  online-softmax running max
    l_ref,        # VMEM (N, 1)        f32  online-softmax running sum
    *,
    scale, weight_loss, num_classes, tile_c):

    c = pl.program_id(0)
    n_tiles = pl.num_programs(0)

    @pl.when(c == 0)
    def _():
        m_ref[...] = jnp.full_like(m_ref, -1e30)
        l_ref[...] = jnp.zeros_like(l_ref)

    # Matmul with the raw bf16 weight tile in native MXU orientation
    # (contract last dim of LHS with first dim of RHS) ...
    w = w_ref[...]                                                     # (D, tile_c)
    raw = jnp.dot(fd_ref[...], w, preferred_element_type=jnp.float32)  # (N, tile_c)

    # ... then post-scale by per-class inverse L2 norms (O(N*tile_c) instead
    # of normalizing the whole tile).  Padded classes have norm 0 -> raw 0.
    wf = w.astype(jnp.float32)
    inv_norm = lax.rsqrt(
        jnp.maximum(jnp.sum(wf * wf, axis=0, keepdims=True), 1e-24))   # (1, tile_c)
    cos_t = jnp.clip(raw * inv_norm, -1.0, 1.0)

    # Hard-example reweighting against cos_theta_m, using the already-updated t.
    t_new = t_ref[0]
    cos_t = jnp.where(cos_t > ctm_ref[...], cos_t * (t_new + cos_t), cos_t)

    # scatter_(1, targets, final_target_logit): override the target column,
    # then mask padded classes out of the softmax.
    col = c * tile_c + lax.broadcasted_iota(jnp.int32, cos_t.shape, 1)
    cos_t = jnp.where(col == tgt_ref[...], ftl_ref[...], cos_t)
    logits = jnp.where(col < num_classes, cos_t * scale, -1e30)

    # Online logsumexp accumulation across class tiles.
    m_old = m_ref[...]
    m_new = jnp.maximum(m_old, jnp.max(logits, axis=-1, keepdims=True))
    l_ref[...] = (jnp.exp(m_old - m_new) * l_ref[...]
                  + jnp.sum(jnp.exp(logits - m_new), axis=-1, keepdims=True))
    m_ref[...] = m_new

    # Finalize: CrossEntropyLoss(reduction='mean') * weight.
    @pl.when(c == n_tiles - 1)
    def _():
        lse = m_ref[...] + jnp.log(l_ref[...])                         # (N, 1)
        loss_ref[0] = jnp.mean(lse - scale * ftl_ref[...]) * weight_loss


def arcface_loss_dropout(features, targets, weight, t, key, *,
                         scale=30.0, margin=0.3, dropout_rate=0.1,
                         weight_loss=1.0, tile_c=1024):
    """Training-mode forward. Returns (loss, updated t buffer)."""
    N, D = features.shape
    C = weight.shape[0]

    cos_m = math.cos(margin)
    sin_m = math.sin(margin)
    threshold = math.cos(math.pi - margin)
    mm = math.sin(math.pi - margin) * margin

    # ---- O(N*D) per-row setup hoisted to XLA (cheap vs. the O(C*D) stream):
    # normalize + dropout, target logit, cos_theta_m, final_target_logit and
    # the running-buffer EMA (dropout is applied AFTER F.normalize, matching
    # the PyTorch reference's `self.dropout(F.normalize(features))`).
    feat_n = _row_l2_normalize(features.astype(jnp.float32))
    if dropout_rate > 0.0:
        keep = jax.random.uniform(key, (N, D)) >= dropout_rate
        feat_d = feat_n * (keep.astype(jnp.float32) * (1.0 / (1.0 - dropout_rate)))
    else:
        feat_d = feat_n

    tgt_i32 = targets.astype(jnp.int32)
    w_tgt_n = _row_l2_normalize(jnp.take(weight.astype(jnp.float32), tgt_i32, axis=0))
    target_logit = jnp.clip(
        jnp.sum(feat_d * w_tgt_n, axis=-1, keepdims=True), -1.0, 1.0)

    # t update happens BEFORE hard-example reweighting (PyTorch in-place order).
    t_prev = jnp.asarray(t, jnp.float32).reshape(-1)[0]
    t_new = jnp.mean(target_logit) * 0.01 + 0.99 * t_prev

    sin_theta = jnp.sqrt(jnp.maximum(1.0 - target_logit * target_logit, 0.0))
    cos_theta_m = target_logit * cos_m - sin_theta * sin_m
    final_target_logit = jnp.where(target_logit > threshold,
                                   cos_theta_m, target_logit - mm)

    fd_bf16 = feat_d.astype(jnp.bfloat16)

    # ---- class weight: bf16, transposed to (D, C).  Keep this copy
    # persistent across steps in real training; already-bf16 input is used
    # as-is (no re-cast).  Non-target logits are bf16-precision (the target
    # column / t EMA stay f32 — documented precision tradeoff).
    w_bf16 = weight if weight.dtype == jnp.bfloat16 else weight.astype(jnp.bfloat16)
    w_t = w_bf16.T                                                     # (D, C)

    # ---- tile_c: multiple of 128 (lane-dense matmul output, unmasked
    # reductions), sized against the physical VMEM of this generation.
    round_up = lambda a, b: -(-a // b) * b
    tile_c = max(128, (int(tile_c) // 128) * 128)
    tile_c = min(tile_c, round_up(C, 128))
    try:
        phys_vmem = int(pltpu.get_tpu_info().vmem_capacity_bytes)
    except Exception:
        phys_vmem = 64 << 20          # v7x per-TensorCore (smallest generation)
    resident = (2 * N * D * 2                    # fd bf16, double-buffered
                + 10 * max(N, 8) * 128 * 4       # (N,1) inputs/scratch, lane-padded
                + (4 << 20))                     # compiler temps / slack
    budget = phys_vmem - (12 << 20)              # leave DMA/headroom
    while tile_c > 128 and 2 * tile_c * D * 2 + resident > budget:
        tile_c -= 128
    c_pad = round_up(C, tile_c)
    n_tiles = c_pad // tile_c
    w_padded = w_t if c_pad == C else jnp.pad(w_t, ((0, 0), (0, c_pad - C)))

    vmem_limit = int(min(max(2 * tile_c * D * 2 + resident + (8 << 20), 32 << 20),
                         phys_vmem - (8 << 20)))

    kernel = functools.partial(
        arcface_kernel,
        scale=float(scale), weight_loss=float(weight_loss),
        num_classes=C, tile_c=tile_c)

    loss = pl.pallas_call(
        kernel,
        grid=(n_tiles,),
        in_specs=[
            pl.BlockSpec(memory_space=pltpu.MemorySpace.SMEM),          # t (updated)
            pl.BlockSpec((N, 1), lambda c: (0, 0)),                     # targets
            pl.BlockSpec((N, D), lambda c: (0, 0)),                     # fd (bf16)
            pl.BlockSpec((N, 1), lambda c: (0, 0)),                     # cos_theta_m
            pl.BlockSpec((N, 1), lambda c: (0, 0)),                     # final tgt logit
            pl.BlockSpec((D, tile_c), lambda c: (0, c)),                # weight tiles
        ],
        out_specs=pl.BlockSpec(memory_space=pltpu.MemorySpace.SMEM),    # loss
        out_shape=jax.ShapeDtypeStruct((1,), jnp.float32),
        scratch_shapes=[
            pltpu.VMEM((N, 1), jnp.float32),    # running max
            pltpu.VMEM((N, 1), jnp.float32),    # running sum
        ],
        compiler_params=pltpu.CompilerParams(
            dimension_semantics=("arbitrary",),
            vmem_limit_bytes=vmem_limit),
    )(t_new.reshape(1), tgt_i32.reshape(N, 1), fd_bf16,
      cos_theta_m, final_target_logit, w_padded)

    return loss[0], t_new


def _reference(features, targets, weight, t, key, *,
               scale, margin, dropout_rate, weight_loss):
    """Pure-JAX f32 reference of the PyTorch forward (same dropout mask)."""
    N, D = features.shape
    C = weight.shape[0]
    cos_m = math.cos(margin)
    sin_m = math.sin(margin)
    threshold = math.cos(math.pi - margin)
    mm = math.sin(math.pi - margin) * margin

    feat_n = _row_l2_normalize(features.astype(jnp.float32))
    if dropout_rate > 0.0:
        keep = jax.random.uniform(key, (N, D)) >= dropout_rate
        feat_d = feat_n * (keep.astype(jnp.float32) * (1.0 / (1.0 - dropout_rate)))
    else:
        feat_d = feat_n
    w_n = _row_l2_normalize(weight.astype(jnp.float32))
    cos = jnp.clip(feat_d @ w_n.T, -1.0, 1.0)
    tl = jnp.take_along_axis(cos, targets[:, None].astype(jnp.int32), axis=1)
    sin_t = jnp.sqrt(jnp.maximum(1.0 - tl * tl, 0.0))
    ctm = tl * cos_m - sin_t * sin_m
    ftl = jnp.where(tl > threshold, ctm, tl - mm)
    t_prev = jnp.asarray(t, jnp.float32).reshape(-1)[0]
    t_new = jnp.mean(tl) * 0.01 + 0.99 * t_prev
    cos = jnp.where(cos > ctm, cos * (t_new + cos), cos)
    onehot = jnp.arange(C)[None, :] == targets[:, None]
    cos = jnp.where(onehot, ftl, cos)
    logits = cos * scale
    m = jnp.max(logits, axis=-1, keepdims=True)
    lse = m + jnp.log(jnp.sum(jnp.exp(logits - m), axis=-1, keepdims=True))
    loss = jnp.mean(lse - scale * ftl) * weight_loss
    return loss, t_new


if __name__ == "__main__":
    key = jax.random.PRNGKey(0)
    N, D, C = 8, 256, 300          # batch, in_feat (stand-in for 2048), classes
    k1, k2, k3, k4 = jax.random.split(key, 4)

    features = jax.random.normal(k1, (N, D), jnp.float32)
    targets = jax.random.randint(k2, (N,), 0, C, jnp.int32)

    # nn.init.kaiming_uniform_(linear, a=sqrt(1)) on (C, D): bound = sqrt(3 / D)
    bound = math.sqrt(3.0 / D)
    weight = jax.random.uniform(k3, (C, D), jnp.float32, -bound, bound)

    t0 = jnp.zeros((1,), jnp.float32)   # registered buffer 't'

    # tile_c=128 -> 3 class tiles (last one padded) exercises the streaming loop.
    loss, t_new = arcface_loss_dropout(features, targets, weight, t0, k4,
                                       tile_c=128)
    jax.block_until_ready((loss, t_new))

    # Loose-tolerance check against the f32 reference (kernel uses bf16 MXU).
    loss_ref, t_ref = _reference(features, targets, weight, t0, k4,
                                 scale=30.0, margin=0.3, dropout_rate=0.1,
                                 weight_loss=1.0)
    lv, lr = float(loss), float(loss_ref)
    assert abs(lv - lr) <= 0.05 * abs(lr) + 0.2, (lv, lr)
    assert abs(float(t_new) - float(t_ref)) <= 1e-4, (float(t_new), float(t_ref))

    print("KERNEL_OK")
</pallas_src>

<mosaic_0001>
module attributes {stable_mosaic.version = 11 : i64} {
  func.func @arcface_kernel(%arg0: i32, %arg1: memref<1xf32, #tpu.memory_space<smem>>, %arg2: memref<8x1xi32, #tpu.memory_space<vmem>>, %arg3: memref<8x256xbf16, #tpu.memory_space<vmem>>, %arg4: memref<8x1xf32, #tpu.memory_space<vmem>>, %arg5: memref<8x1xf32, #tpu.memory_space<vmem>>, %arg6: memref<256x128xbf16, #tpu.memory_space<vmem>>, %arg7: memref<1xf32, #tpu.memory_space<smem>>, %arg8: memref<8x1xf32, #tpu.memory_space<vmem>>, %arg9: memref<8x1xf32, #tpu.memory_space<vmem>>) attributes {dimension_semantics = [#tpu.dimension_semantics<arbitrary>], iteration_bounds = array<i64: 3>, scalar_prefetch = 0 : i64, scratch_operands = 2 : i64, tpu.core_type = #tpu.core_type<tc>, window_params = [{transform_indices = @transform_0, window_bounds = array<i64: 1>}, {pipeline_mode = #tpu.pipeline_mode<synchronous>, transform_indices = @transform_1, window_bounds = array<i64: 8, 1>}, {pipeline_mode = #tpu.pipeline_mode<synchronous>, transform_indices = @transform_2, window_bounds = array<i64: 8, 256>}, {pipeline_mode = #tpu.pipeline_mode<synchronous>, transform_indices = @transform_3, window_bounds = array<i64: 8, 1>}, {pipeline_mode = #tpu.pipeline_mode<synchronous>, transform_indices = @transform_4, window_bounds = array<i64: 8, 1>}, {transform_indices = @transform_5, window_bounds = array<i64: 256, 128>}, {transform_indices = @transform_6, window_bounds = array<i64: 1>}]} {
    %c0_i32 = arith.constant 0 : i32
    %0 = arith.cmpi eq, %arg0, %c0_i32 : i32
    %1 = arith.extui %0 : i1 to i32
    %c0_i32_0 = arith.constant 0 : i32
    %2 = arith.cmpi ne, %1, %c0_i32_0 : i32
    scf.if %2 {
      %cst_28 = arith.constant -1.000000e+30 : f32
      %63 = vector.broadcast %cst_28 : f32 to vector<8x1xf32>
      %c0_29 = arith.constant 0 : index
      %c0_30 = arith.constant 0 : index
      %64 = vector.load %arg8[%c0_29, %c0_30] : memref<8x1xf32, #tpu.memory_space<vmem>>, vector<8x1xf32>
      tpu.vector_store %arg8[%c0_29, %c0_30], %63 {strides = array<i32>} : memref<8x1xf32, #tpu.memory_space<vmem>>, vector<8x1xf32>,
      %cst_31 = arith.constant 0.000000e+00 : f32
      %65 = vector.broadcast %cst_31 : f32 to vector<8x1xf32>
      %c0_32 = arith.constant 0 : index
      %c0_33 = arith.constant 0 : index
      %66 = vector.load %arg9[%c0_32, %c0_33] : memref<8x1xf32, #tpu.memory_space<vmem>>, vector<8x1xf32>
      tpu.vector_store %arg9[%c0_32, %c0_33], %65 {strides = array<i32>} : memref<8x1xf32, #tpu.memory_space<vmem>>, vector<8x1xf32>,
    } else {
    }
    %c0 = arith.constant 0 : index
    %c0_1 = arith.constant 0 : index
    %3 = vector.load %arg6[%c0, %c0_1] : memref<256x128xbf16, #tpu.memory_space<vmem>>, vector<256x128xbf16>
    %c0_2 = arith.constant 0 : index
    %c0_3 = arith.constant 0 : index
    %4 = vector.load %arg3[%c0_2, %c0_3] : memref<8x256xbf16, #tpu.memory_space<vmem>>, vector<8x256xbf16>
    %cst = arith.constant dense<0.000000e+00> : vector<8x128xf32>
    %5 = tpu.matmul %4, %3, %cst {dimension_numbers = #tpu.dot_dimension_numbers<[1], [0], [0], [1], [0, 0, 1, 1], [], []>} : vector<8x256xbf16>, vector<256x128xbf16>, vector<8x128xf32> -> vector<8x128xf32>
    %6 = arith.extf %3 : vector<256x128xbf16> to vector<256x128xf32>
    %7 = arith.mulf %6, %6 : vector<256x128xf32>
    %cst_4 = arith.constant dense<0.000000e+00> : vector<128xf32>
    %8 = vector.multi_reduction <add>, %7, %cst_4 [0] : vector<256x128xf32> to vector<128xf32>
    %9 = vector.shape_cast %8 : vector<128xf32> to vector<1x128xf32>
    %cst_5 = arith.constant 1.000000e-24 : f32
    %10 = vector.broadcast %cst_5 : f32 to vector<1x128xf32>
    %11 = arith.maximumf %9, %10 : vector<1x128xf32>
    %12 = math.rsqrt %11 : vector<1x128xf32>
    %13 = vector.broadcast %12 : vector<1x128xf32> to vector<8x128xf32>
    %14 = arith.mulf %5, %13 : vector<8x128xf32>
    %cst_6 = arith.constant -1.000000e+00 : f32
    %cst_7 = arith.constant 1.000000e+00 : f32
    %15 = vector.broadcast %cst_6 : f32 to vector<8x128xf32>
    %16 = arith.maximumf %15, %14 : vector<8x128xf32>
    %17 = vector.broadcast %cst_7 : f32 to vector<8x128xf32>
    %18 = arith.minimumf %17, %16 : vector<8x128xf32>
    %c0_8 = arith.constant 0 : index
    %19 = memref.load %arg1[%c0_8] : memref<1xf32, #tpu.memory_space<smem>>
    %c0_9 = arith.constant 0 : index
    %c0_10 = arith.constant 0 : index
    %20 = vector.load %arg4[%c0_9, %c0_10] : memref<8x1xf32, #tpu.memory_space<vmem>>, vector<8x1xf32>
    %21 = vector.broadcast %20 : vector<8x1xf32> to vector<8x128xf32>
    %22 = arith.cmpf ogt, %18, %21 : vector<8x128xf32>
    %23 = vector.broadcast %19 : f32 to vector<8x128xf32>
    %24 = arith.addf %23, %18 : vector<8x128xf32>
    %25 = arith.mulf %18, %24 : vector<8x128xf32>
    %26 = arith.select %22, %25, %18 : vector<8x128xi1>, vector<8x128xf32>
    %c128_i32 = arith.constant 128 : i32
    %27 = arith.muli %arg0, %c128_i32 : i32
    %28 = tpu.iota {dimensions = array<i32: 1>} : vector<8x128xi32>
    %29 = vector.broadcast %27 : i32 to vector<8x128xi32>
    %30 = arith.addi %29, %28 : vector<8x128xi32>
    %c0_11 = arith.constant 0 : index
    %c0_12 = arith.constant 0 : index
    %31 = vector.load %arg2[%c0_11, %c0_12] : memref<8x1xi32, #tpu.memory_space<vmem>>, vector<8x1xi32>
    %32 = vector.broadcast %31 : vector<8x1xi32> to vector<8x128xi32>
    %33 = arith.cmpi eq, %30, %32 : vector<8x128xi32>
    %c0_13 = arith.constant 0 : index
    %c0_14 = arith.constant 0 : index
    %34 = vector.load %arg5[%c0_13, %c0_14] : memref<8x1xf32, #tpu.memory_space<vmem>>, vector<8x1xf32>
    %35 = vector.shape_cast %34 : vector<8x1xf32> to vector<8x1xf32>
    %36 = vector.broadcast %35 : vector<8x1xf32> to vector<8x128xf32>
    %37 = arith.select %33, %36, %26 : vector<8x128xi1>, vector<8x128xf32>
    %c300_i32 = arith.constant 300 : i32
    %38 = vector.broadcast %c300_i32 : i32 to vector<8x128xi32>
    %39 = arith.cmpi slt, %30, %38 : vector<8x128xi32>
    %cst_15 = arith.constant 3.000000e+01 : f32
    %40 = vector.broadcast %cst_15 : f32 to vector<8x128xf32>
    %41 = arith.mulf %37, %40 : vector<8x128xf32>
    %cst_16 = arith.constant -1.000000e+30 : f32
    %42 = vector.broadcast %cst_16 : f32 to vector<8x128xf32>
    %43 = arith.select %39, %41, %42 : vector<8x128xi1>, vector<8x128xf32>
    %c0_17 = arith.constant 0 : index
    %c0_18 = arith.constant 0 : index
    %44 = vector.load %arg8[%c0_17, %c0_18] : memref<8x1xf32, #tpu.memory_space<vmem>>, vector<8x1xf32>
    %cst_19 = arith.constant dense<0xFF800000> : vector<8xf32>
    %45 = vector.multi_reduction <maximumf>, %43, %cst_19 [1] : vector<8x128xf32> to vector<8xf32>
    %46 = vector.shape_cast %45 : vector<8xf32> to vector<8x1xf32>
    %47 = arith.maximumf %44, %46 : vector<8x1xf32>
    %48 = arith.subf %44, %47 : vector<8x1xf32>
    %49 = math.exp %48 : vector<8x1xf32>
    %c0_20 = arith.constant 0 : index
    %c0_21 = arith.constant 0 : index
    %50 = vector.load %arg9[%c0_20, %c0_21] : memref<8x1xf32, #tpu.memory_space<vmem>>, vector<8x1xf32>
    %51 = arith.mulf %49, %50 : vector<8x1xf32>
    %52 = vector.broadcast %47 : vector<8x1xf32> to vector<8x128xf32>
    %53 = arith.subf %43, %52 : vector<8x128xf32>
    %54 = math.exp %53 : vector<8x128xf32>
    %cst_22 = arith.constant dense<0.000000e+00> : vector<8xf32>
    %55 = vector.multi_reduction <add>, %54, %cst_22 [1] : vector<8x128xf32> to vector<8xf32>
    %56 = vector.shape_cast %55 : vector<8xf32> to vector<8x1xf32>
    %57 = arith.addf %51, %56 : vector<8x1xf32>
    %c0_23 = arith.constant 0 : index
    %c0_24 = arith.constant 0 : index
    %58 = vector.load %arg9[%c0_23, %c0_24] : memref<8x1xf32, #tpu.memory_space<vmem>>, vector<8x1xf32>
    tpu.vector_store %arg9[%c0_23, %c0_24], %57 {strides = array<i32>} : memref<8x1xf32, #tpu.memory_space<vmem>>, vector<8x1xf32>,
    %c0_25 = arith.constant 0 : index
    %c0_26 = arith.constant 0 : index
    %59 = vector.load %arg8[%c0_25, %c0_26] : memref<8x1xf32, #tpu.memory_space<vmem>>, vector<8x1xf32>
    tpu.vector_store %arg8[%c0_25, %c0_26], %47 {strides = array<i32>} : memref<8x1xf32, #tpu.memory_space<vmem>>, vector<8x1xf32>,
    %c2_i32 = arith.constant 2 : i32
    %60 = arith.cmpi eq, %arg0, %c2_i32 : i32
    %61 = arith.extui %60 : i1 to i32
    %c0_i32_27 = arith.constant 0 : i32
    %62 = arith.cmpi ne, %61, %c0_i32_27 : i32
    scf.if %62 {
      %c0_28 = arith.constant 0 : index
      %c0_29 = arith.constant 0 : index
      %63 = vector.load %arg8[%c0_28, %c0_29] : memref<8x1xf32, #tpu.memory_space<vmem>>, vector<8x1xf32>
      %c0_30 = arith.constant 0 : index
      %c0_31 = arith.constant 0 : index
      %64 = vector.load %arg9[%c0_30, %c0_31] : memref<8x1xf32, #tpu.memory_space<vmem>>, vector<8x1xf32>
      %65 = math.log %64 : vector<8x1xf32>
      %66 = arith.addf %63, %65 : vector<8x1xf32>
      %c0_32 = arith.constant 0 : index
      %c0_33 = arith.constant 0 : index
      %67 = vector.load %arg5[%c0_32, %c0_33] : memref<8x1xf32, #tpu.memory_space<vmem>>, vector<8x1xf32>
      %cst_34 = arith.constant 3.000000e+01 : f32
      %68 = vector.broadcast %cst_34 : f32 to vector<8x1xf32>
      %69 = arith.mulf %68, %67 : vector<8x1xf32>
      %70 = arith.subf %66, %69 : vector<8x1xf32>
      %71 = vector.shape_cast %70 : vector<8x1xf32> to vector<1x8x1xf32>
      %cst_35 = arith.constant dense<0.000000e+00> : vector<1xf32>
      %72 = vector.multi_reduction <add>, %71, %cst_35 [1, 2] : vector<1x8x1xf32> to vector<1xf32>
      %73 = vector.shape_cast %72 : vector<1xf32> to vector<1x1x1xf32>
      %74 = vector.extract %73[0, 0, 0] : f32 from vector<1x1x1xf32>
      %cst_36 = arith.constant 8.000000e+00 : f32
      %75 = arith.divf %74, %cst_36 : f32
      %cst_37 = arith.constant 1.000000e+00 : f32
      %76 = arith.mulf %75, %cst_37 : f32
      %c0_38 = arith.constant 0 : index
      %77 = memref.load %arg7[%c0_38] : memref<1xf32, #tpu.memory_space<smem>>
      memref.store %76, %arg7[%c0_38] : memref<1xf32, #tpu.memory_space<smem>>
    } else {
    }
    return
  }
  func.func @transform_0(%arg0: i32) -> i32 {
    %c0_i32 = arith.constant 0 : i32
    %c0_i32_0 = arith.constant 0 : i32
    return %c0_i32 : i32
  }
  func.func @transform_1(%arg0: i32) -> (i32, i32) {
    %c0_i32 = arith.constant 0 : i32
    %c0_i32_0 = arith.constant 0 : i32
    %c0_i32_1 = arith.constant 0 : i32
    return %c0_i32, %c0_i32_0 : i32, i32
  }
  func.func @transform_2(%arg0: i32) -> (i32, i32) {
    %c0_i32 = arith.constant 0 : i32
    %c0_i32_0 = arith.constant 0 : i32
    %c0_i32_1 = arith.constant 0 : i32
    return %c0_i32, %c0_i32_0 : i32, i32
  }
  func.func @transform_3(%arg0: i32) -> (i32, i32) {
    %c0_i32 = arith.constant 0 : i32
    %c0_i32_0 = arith.constant 0 : i32
    %c0_i32_1 = arith.constant 0 : i32
    return %c0_i32, %c0_i32_0 : i32, i32
  }
  func.func @transform_4(%arg0: i32) -> (i32, i32) {
    %c0_i32 = arith.constant 0 : i32
    %c0_i32_0 = arith.constant 0 : i32
    %c0_i32_1 = arith.constant 0 : i32
    return %c0_i32, %c0_i32_0 : i32, i32
  }
  func.func @transform_5(%arg0: i32) -> (i32, i32) {
    %c0_i32 = arith.constant 0 : i32
    %c0_i32_0 = arith.constant 0 : i32
    return %c0_i32, %arg0 : i32, i32
  }
  func.func @transform_6(%arg0: i32) -> i32 {
    %c0_i32 = arith.constant 0 : i32
    %c0_i32_0 = arith.constant 0 : i32
    return %c0_i32 : i32
  }
}

</mosaic_0001>

<bundles_post_ra>
// kernel: tpu_custom_call.1
= control target key start
LH: loop header
LB: loop body
LE: loop exit
PB: predicated region body
PF: predicated region fallthrough
CT: control target
= control target key end

     0   :  { %s1150_s0 = inlined_call_operand.<no memory space> [shape: f32[1], index: 0, kind: input, shape index: {}]   ;;  %s1151_s1 = inlined_call_operand.vmem [shape: s32[8,1], index: 1, kind: input, shape index: {}]   ;;  %s1152_s2 = inlined_call_operand.vmem [shape: bf16[8,256], index: 2, kind: input, shape index: {}]   ;;  %s1153_s3 = inlined_call_operand.vmem [shape: f32[8,1], index: 3, kind: input, shape index: {}]   ;;  %s1154_s4 = inlined_call_operand.vmem [shape: f32[8,1], index: 4, kind: input, shape index: {}]   ;;  %s1155_s5 = inlined_call_operand.hbm [shape: bf16[256,384], index: 5, kind: input, shape index: {}]   ;;  %s1156_s6 = inlined_call_operand.hbm [shape: f32[1], index: 6, kind: output, shape index: {}]  }
   0x1   :  { %11 = sst [smem:[#allocation4]] %s1150_s0 }
   0x2   :  { %12 = vsyncpa [#allocation6], 0 }
   0x3   :  { %14 = vsyncpa [#allocation6 + $0x1], 0 }
   0x4   :  { %15 = vsyncpa [#allocation7], 0  ;;  %s963_s23 = smov 0   ;;  %s965_s24 = smov 0  }
   0x5   :  { %s967_s25 = smov 0   ;;  %s969_s26 = smov 0  }
   0x6 LB: > { %s982_s0 = sadd.s32 4294967295, %s915_s26   ;;  %s985_s27 = sadd.s32 1, %s915_s26   ;;  %s915_s26 = sphi %s969_s26, %s1164_s26   ;;  %s911_s25 = sphi %s967_s25, %s1163_s25   ;;  %s907_s24 = sphi %s965_s24, %s1162_s24   ;;  %s903_s23 = sphi %s963_s23, %s1161_s23  }
   0x7   : > { %s130_s28 = ssub.s32 %s915_s26, %s985_s27  ;;  %s133_s29 = sadd.s32 1, %s911_s25 }
   0x8   : > { %p131_p0 = scmp.eq.s32.totalorder %s130_s28, 0  ;;  %p140_p1 = scmp.ne.s32.totalorder %s911_s25, %s907_s24 }
   0x9   : > { %p141_p2 = scmp.eq.s32.totalorder %s915_s26, 0  ;;  %p146_p3 = scmp.ne.s32.totalorder %s907_s24, %s903_s23 }
   0xa   : > { %s995_s30 = scalar_select %p131_p0, %s911_s25, %s133_s29  }
   0xb   : > { %p142_p4 = por %p141_p2, %p140_p1  ;;  %p147_p5 = scmp.eq.s32.totalorder %s982_s0, 0 }
   0xc   : > { %p753_p6 = scmp.lt.s32.totalorder %s915_s26, 3  ;;  %s206_s8 = sand.u32 1, %s911_s25  }
   0xd   : > { %p999_p7 = por %p147_p5, %p146_p3  ;;  %s689_s9 = sshll.u32 %s206_s8, 7 }
   0xe   : > { %s690_s10 = sshll.u32 %s915_s26, 6  ;;  %s210_s14 = scalar_lea.vmem [#allocation5], %s689_s9 }
   0xf   : > { %s1158_s7 = scalar_select %p999_p7, 1, 0 }
  0x10   : > { %s1008_s13 = scalar_lea.hbm %s1155_s5, %s690_s10  ;;  %s216_s15 = sshll.u32 %s210_s14, 4  ;;  %s1010_s15 = int_to_ptr.vmem [resolvable:$true] %s216_s15 }
  0x11   : > { %p1012_p8 = pnand %p753_p6, %p142_p4  ;;  %s1016_s17 = scalar_lea.sflag [#allocation6], %s206_s8 }
  0x12   : > { %s839_s18 = scalar_lea.hbm %s1008_s13, 2048  ;;  %s844_s21 = scalar_lea.hbm %s1155_s5, 6144 }
  0x13   : > { %p840_p9 = scmp.ne.s32.totalorder %s1008_s13, %s839_s18  ;;  %p841_p10 = pneg %p1012_p8 }
  0x14   : > { %p845_p13 = scmp.lt.s32.totalorder %s1008_s13, %s1155_s5  ;;  %p846_p0 = scmp.lt.s32.totalorder %s844_s21, %s839_s18 }
  0x15   : > { %p842_p11 = pnand %p841_p10, %p840_p9 }
  0x16   : > { %p847_p1 = por %p846_p0, %p845_p13 }
  0x17   : > { %p843_p12 = pneg %p842_p11 }
  0x19   : > { %p848_p2 = pnand %p847_p1, %p843_p12 }
  0x1b   : > { %851 = shalt.err (!%p848_p2)
}
  0x1c   : > { %s852_s28 = scalar_lea.vmem %s1010_s15, 2048  ;;  %s917_s29 = smov [#allocation5]  }
  0x1d   : > { %p853_p3 = scmp.ne.s32.totalorder %s1010_s15, %s852_s28  ;;  %s857_s8 = sshll.u32 %s917_s29, 4  ;;  %s858_s8 = int_to_ptr.vmem [resolvable:$false] %s857_s8 }
  0x1e   : > { %s859_s9 = scalar_lea.vmem %s858_s8, 4096  ;;  %p860_p6 = scmp.lt.s32.totalorder %s1010_s15, %s858_s8 }
  0x1f   : > { %p855_p4 = pnand %p853_p3, %p841_p10  ;;  %p861_p9 = scmp.lt.s32.totalorder %s859_s9, %s852_s28 }
  0x21   : > { %p856_p5 = pneg %p855_p4  ;;  %p862_p11 = por %p861_p9, %p860_p6 }
  0x23   : > { %p863_p7 = pnand %p862_p11, %p856_p5 }
  0x25   : > { %866 = shalt.err (!%p863_p7)
}
  0x26   : > { %s918_s10 = smov 192   ;;  %s919_s11 = smov 64  }
  0x27   : > { %s920_s12 = smov 4   ;;  %p691_p10 = scmp.ge.s32.totalorder %s915_s26, 1 }
  0x28   : > { %752 = dma.hbm_to_vmem [thread:$0]  (!%p1012_p8), %s1008_s13, 2048, %s1010_s15, %s1016_s17, %s918_s10, %s919_s11, %s920_s12  }
  0x29   : > { %p224_p12 = scmp.lt.s32.totalorder %s915_s26, 4 }
  0x2b   : > { %p225_p13 = pnand %p691_p10, %p224_p12 }
  0x2c   : > { %s230_s14 = sand.u32 (!%p225_p13), 1, %s907_s24   ;;  %p1160_p7 = scmp.ne.s32.totalorder (!%p225_p13), %s1158_s7, 0 }
  0x2d   : > { %228 = sbr.rel (%p225_p13) target bundleno = 964 (0x3c4), region = 44  ;;  %s692_s18 = sshll.u32 (!%p225_p13), %s230_s14, 7 }
  0x2e   : > { %s231_s19 = scalar_lea.sflag (!%p225_p13), [#allocation6], %s230_s14  ;;  %s1040_s20 = scalar_lea.vmem (!%p225_p13), [#allocation5], %s692_s18 }
  0x32   : > { %894 = dma.done.wait (%p1160_p7), %s231_s19, 2048  }
  0x33   : > { %896 = vsyncadd (%p1160_p7), %s231_s19, 4294965248  ;;  %p693_p0 = scmp.ne.s32.totalorder %s982_s0, 0 }
  0x35   : > { %262 = sbr.rel (%p693_p0) target bundleno = 60 (0x3c), region = 52 }
  0x3a   : > { %vm263_vm0 = vcmask 7168   ;;  %v921_v0 = vmov -1e+30   ;;  %v922_v1 = vmov 0.0  }
  0x3b   : > { %264 = vst.msk [vmem:[#allocation2] sm:$0xff] %vm263_vm0, %v921_v0  ;;  %265 = vst.msk [vmem:[#allocation3] sm:$0xff] %vm263_vm0, %v922_v1 }
  0x3c PF: > { %v1048_v2 = vld [vmem:[%s1040_s20 + $0x78] sm:$0xff]   ;;  %v1054_v4 = vld [vmem:[%s1040_s20 + $0x70] sm:$0xff]   ;;  %v923_v6 = vmov 0   ;;  %v1060_v7 = vld [vmem:[%s1040_s20 + $0x68] sm:$0xff]   ;;  %s548_s23 = sld [smem:[#allocation4]]  ;;  %s713_s28 = sshll.u32 %s982_s0, 7 }
  0x3d   : > { %v1051_v3 = vld [vmem:[%s1040_s20 + $0x38] sm:$0xff]   ;;  %v1057_v5 = vld [vmem:[%s1040_s20 + $0x30] sm:$0xff]   ;;  %795 = vset.pattern.permute.xlu0 %v923_v6  ;;  %796 = vset.pattern.permute.xlu1 %v923_v6  ;;  %v1066_v8 = vld [vmem:[%s1040_s20 + $0x28] sm:$0xff]   ;;  %vm600_vm4 = vcmask 7168   ;;  %p714_p8 = scmp.ne.s32.totalorder %s982_s0, 2 }
  0x3e   : > { %719 = vmatprep.subr.bf16.mxu0 %v1048_v2  ;;  %v549_v9 = vld [vmem:[%s1153_s3] sm:$0xff]  ;;  %v1072_v10 = vld [vmem:[%s1040_s20 + $0x60] sm:$0xff]   ;;  %v1084_v14 = vld [vmem:[%s1040_s20 + $0x58] sm:$0xff]   ;;  %v452_v48 = vunpack.c.l.bf16 %v1066_v8  ;;  %v453_v51 = vunpack.c.h.bf16 %v1066_v8  ;;  %v454_v54 = vunpack.c.l.bf16 %v1057_v5  ;;  %v455_v57 = vunpack.c.h.bf16 %v1057_v5 }
  0x3f   : > { %720 = vmatpush3.bf16.msra.mxu0 %v1051_v3  ;;  %552 = vperm.xlu0 %795, %v549_v9   ;;  %v570_v11 = vld [vmem:[%s1154_s4] sm:$0xff]  ;;  %v274_v13 = vld [vmem:[%s1040_s20 + $0x20] sm:$0xff]   ;;  %v272_v15 = vld [vmem:[%s1040_s20 + $0x18] sm:$0xff]   ;;  %v456_v60 = vunpack.c.l.bf16 %v1051_v3  ;;  %v457_v63 = vunpack.c.h.bf16 %v1051_v3 }
  0x40   : > { %721 = vmatprep.subr.bf16.mxu0 %v1054_v4  ;;  %v565_v12 = vld [vmem:[%s1151_s1] sm:$0xff]  ;;  %573 = vperm.xlu1 %796, %v570_v11   ;;  %v268_v17 = vld [vmem:[%s1040_s20 + $0x8] sm:$0xff]   ;;  %v266_v22 = vld [vmem:[%s1040_s20] sm:$0xff]   ;;  %v448_v35 = vunpack.c.l.bf16 %v272_v15  ;;  %v449_v38 = vunpack.c.h.bf16 %v272_v15  ;;  %v450_v41 = vunpack.c.l.bf16 %v274_v13  ;;  %v451_v44 = vunpack.c.h.bf16 %v274_v13 }
  0x41   : > { %v1090_v16 = vld [vmem:[%s1040_s20 + $0x50] sm:$0xff]   ;;  %v444_v19 = vunpack.c.l.bf16 %v268_v17  ;;  %v1099_v21 = vld [vmem:[%s1040_s20 + $0x48] sm:$0xff]   ;;  %v445_v23 = vunpack.c.h.bf16 %v268_v17  ;;  %v442_v24 = vunpack.c.l.bf16 %v266_v22  ;;  %v443_v25 = vunpack.c.h.bf16 %v266_v22  ;;  %v282_v31 = vld [vmem:[%s1040_s20 + $0x40] sm:$0xff]  }
  0x42   : > { %v270_v18 = vld [vmem:[%s1040_s20 + $0x10] sm:$0xff]   ;;  %v480_v42 = vmul.f32 %v448_v35, %v448_v35  ;;  %v481_v45 = vmul.f32 %v449_v38, %v449_v38  ;;  %v482_v49 = vmul.f32 %v450_v41, %v450_v41  ;;  %v483_v52 = vmul.f32 %v451_v44, %v451_v44 }
  0x43   : > { %722 = vmatpush3.bf16.msra.mxu0 %v1057_v5  ;;  %567 = vperm.xlu0 %795, %v565_v12   ;;  %v298_v20 = vld [vmem:[%s1152_s2] sm:$0xff]  ;;  %v446_v26 = vunpack.c.l.bf16 %v270_v18  ;;  %v476_v28 = vmul.f32 %v444_v19, %v444_v19  ;;  %v474_v29 = vmul.f32 %v442_v24, %v442_v24  ;;  %v475_v30 = vmul.f32 %v443_v25, %v443_v25 }
  0x44   : > { %723 = vmatprep.subr.bf16.mxu0 %v1060_v7  ;;  %v695_v27 = vcombine.high %v298_v20, %v298_v20  ;;  %v447_v32 = vunpack.c.h.bf16 %v270_v18  ;;  %v477_v33 = vmul.f32 %v445_v23, %v445_v23  ;;  %v694_v47 = vcombine.low %v298_v20, %v298_v20 }
  0x45   : > { %v506_v34 = vadd.f32 %v475_v30, %v474_v29  ;;  %v478_v36 = vmul.f32 %v446_v26, %v446_v26  ;;  %v484_v55 = vmul.f32 %v452_v48, %v452_v48  ;;  %v485_v58 = vmul.f32 %v453_v51, %v453_v51 }
  0x46   : > { %434 = vmatprep.mubr.bf16.mxu0 %v695_v27  ;;  %v479_v39 = vmul.f32 %v447_v32, %v447_v32  ;;  %v486_v61 = vmul.f32 %v454_v54, %v454_v54  ;;  %v487_v0 = vmul.f32 %v455_v57, %v455_v57  ;;  %v488_v6 = vmul.f32 %v456_v60, %v456_v60 }
  0x47   : > { %724 = vmatpush3.bf16.msra.mxu0 %v1066_v8  ;;  %v507_v37 = vadd.f32 %v506_v34, %v476_v28  ;;  %v458_v8 = vunpack.c.l.bf16 %v282_v31  ;;  %v489_v11 = vmul.f32 %v457_v63, %v457_v63  ;;  %v459_v12 = vunpack.c.h.bf16 %v282_v31 }
  0x48   : > { %725 = vmatprep.subr.bf16.mxu0 %v1072_v10  ;;  %v463_v24 = vunpack.c.h.bf16 %v1090_v16  ;;  %v464_v27 = vunpack.c.l.bf16 %v1084_v14  ;;  %v465_v30 = vunpack.c.h.bf16 %v1084_v14  ;;  %v467_v35 = vunpack.c.h.bf16 %v1072_v10 }
  0x49   : > { %v508_v40 = vadd.f32 %v507_v37, %v477_v33  ;;  %v491_v19 = vmul.f32 %v459_v12, %v459_v12 }
  0x4a   : > { %v496_v33 = vmul.f32 %v464_v27, %v464_v27  ;;  %v499_v41 = vmul.f32 %v467_v35, %v467_v35 }
  0x4b   : > { %726 = vmatpush3.bf16.msra.mxu0 %v274_v13  ;;  %v509_v43 = vadd.f32 %v508_v40, %v478_v36  ;;  %v497_v36 = vmul.f32 %v465_v30, %v465_v30  ;;  %v469_v40 = vunpack.c.h.bf16 %v1060_v7 }
  0x4c   : > { %727 = vmatprep.subr.bf16.mxu0 %v1084_v14  ;;  %v470_v14 = vunpack.c.l.bf16 %v1054_v4 }
  0x4d   : > { %v510_v46 = vadd.f32 %v509_v43, %v479_v39 }
  0x4e   : > { %v502_v48 = vmul.f32 %v470_v14, %v470_v14 }
  0x4f   : > { %728 = vmatpush3.bf16.msra.mxu0 %v272_v15  ;;  %v511_v50 = vadd.f32 %v510_v46, %v480_v42  ;;  %v460_v15 = vunpack.c.l.bf16 %v1099_v21  ;;  %v501_v46 = vmul.f32 %v469_v40, %v469_v40 }
  0x50   : > { %729 = vmatprep.subr.bf16.mxu0 %v1090_v16 }
  0x51   : > { %v512_v53 = vadd.f32 %v511_v50, %v481_v45  ;;  %v492_v23 = vmul.f32 %v460_v15, %v460_v15  ;;  %v471_v45 = vunpack.c.h.bf16 %v1054_v4  ;;  %v473_v50 = vunpack.c.h.bf16 %v1048_v2 }
  0x52   : > { %v556_v15 = vstv %s548_s23 }
  0x53   : > { %730 = vmatpush3.bf16.msra.mxu0 %v270_v18  ;;  %v513_v56 = vadd.f32 %v512_v53, %v482_v49  ;;  %v461_v18 = vunpack.c.h.bf16 %v1099_v21  ;;  %v503_v51 = vmul.f32 %v471_v45, %v471_v45  ;;  %v505_v54 = vmul.f32 %v473_v50, %v473_v50 }
  0x54   : > { %731 = vmatprep.subr.bf16.mxu0 %v1099_v21  ;;  %v466_v21 = vunpack.c.l.bf16 %v1072_v10  ;;  %v472_v10 = vunpack.c.l.bf16 %v1048_v2  ;;  %v561_v2 = vlaneseq }
  0x55   : > { %v514_v59 = vadd.f32 %v513_v56, %v483_v52  ;;  %v493_v25 = vmul.f32 %v461_v18, %v461_v18 }
  0x56   : > { %v498_v38 = vmul.f32 %v466_v21, %v466_v21  ;;  %v504_v53 = vmul.f32 %v472_v10, %v472_v10 }
  0x57   : > { %732 = vmatpush3.bf16.msra.mxu0 %v268_v17  ;;  %v515_v62 = vadd.f32 %v514_v59, %v484_v55  ;;  %v490_v17 = vmul.f32 %v458_v8, %v458_v8 }
  0x58   : > { %733 = vmatprep.subr.bf16.mxu0 %v282_v31  ;;  %v495_v31 = vmul.f32 %v463_v24, %v463_v24 }
  0x59   : > { %v516_v1 = vadd.f32 %v515_v62, %v485_v58 }
  0x5b   : > { %734 = vmatpush3.bf16.msra.mxu0 %v266_v22  ;;  %v517_v9 = vadd.f32 %v516_v1, %v486_v61  ;;  %v462_v22 = vunpack.c.l.bf16 %v1090_v16  ;;  %v468_v16 = vunpack.c.l.bf16 %v1060_v7 }
  0x5d   : > { %v518_v13 = vadd.f32 %v517_v9, %v487_v0  ;;  %v494_v28 = vmul.f32 %v462_v22, %v462_v22  ;;  %v500_v43 = vmul.f32 %v468_v16, %v468_v16 }
  0x5e   : > { %435 = vmatmul.mubr.bf16.vlgmr.msra.gmra.mxu0 %v694_v47 }
  0x5f   : > { %v519_v5 = vadd.f32 %v518_v13, %v488_v6  ;;  %v562_v13 = vand.u32 127, %v561_v2 }
  0x61   : > { %v520_v20 = vadd.f32 %v519_v5, %v489_v11  ;;  %v563_v5 = vstv %s713_s28 }
  0x63   : > { %v521_v3 = vadd.f32 %v520_v20, %v490_v17  ;;  %v564_v20 = vadd.s32 %v563_v5, %v562_v13 }
  0x65   : > { %v522_v26 = vadd.f32 %v521_v3, %v491_v19  ;;  %vm577_vm3 = vcmp.lt.s32.totalorder %v564_v20, 300 }
  0x67   : > { %v523_v29 = vadd.f32 %v522_v26, %v492_v23 }
  0x69   : > { %v524_v32 = vadd.f32 %v523_v29, %v493_v25 }
  0x6b   : > { %v525_v34 = vadd.f32 %v524_v32, %v494_v28  ;;  %v580_v28 = vld [vmem:[#allocation2] sm:$0xff] }
  0x6d   : > { %v526_v37 = vadd.f32 %v525_v34, %v495_v31 }
  0x6f   : > { %v527_v39 = vadd.f32 %v526_v37, %v496_v33  ;;  %v587_v37 = vld [vmem:[#allocation3] sm:$0xff] }
  0x71   : > { %v528_v42 = vadd.f32 %v527_v39, %v497_v36 }
  0x73   : > { %v529_v44 = vadd.f32 %v528_v42, %v498_v38 }
  0x75   : > { %v530_v47 = vadd.f32 %v529_v44, %v499_v41 }
  0x77   : > { %v531_v49 = vadd.f32 %v530_v47, %v500_v43 }
  0x79   : > { %v532_v52 = vadd.f32 %v531_v49, %v501_v46 }
  0x7b   : > { %v533_v7 = vadd.f32 %v532_v52, %v502_v48 }
  0x7d   : > { %v534_v55 = vadd.f32 %v533_v7, %v503_v51 }
  0x7f   : > { %v535_v56 = vadd.f32 %v534_v55, %v504_v53 }
  0x81   : > { %v536_v57 = vadd.f32 %v535_v56, %v505_v54 }
  0x83   : > { %v537_v58 = vrot.slane %v536_v57, 4 }
  0x85   : > { %v538_v59 = vadd.f32 %v537_v58, %v536_v57 }
  0x87   : > { %v539_v4 = vrot.slane %v538_v59, 2 }
  0x89   : > { %v540_v60 = vadd.f32 %v539_v4, %v538_v59 }
  0x8b   : > { %v541_v61 = vrot.slane %v540_v60, 1 }
  0x8d   : > { %v542_v62 = vadd.f32 %v541_v61, %v540_v60 }
  0x8f   : > { %v543_v63 = vmax.f32 %v542_v62, 1e-24 }
  0x91   : > { %831 = vrsqrt.f32 %v543_v63 }
  0x9e   : > { %v832_v1 = vpop.eup %831 }
  0xba   : > { %v553_v9 = vpop.permute.xlu0 %552 }
  0xbb   : > { %v574_v3 = vpop.permute.xlu1 %573 }
  0xbe   : > { %v568_v22 = vpop.permute.xlu0 %567 }
  0xbf   : > { %vm569_vm2 = vcmp.eq.s32.totalorder %v564_v20, %v568_v22 }
 0x11e   : > { %v735_v0 = vpop.f32.mrf.mxu0 }
 0x120   : > { %v736_v6 = vpop.f32.mrf.mxu0 }
 0x121   : > { %v737_v8 = vadd.f32 %v736_v6, %v735_v0 }
 0x122   : > { %v738_v11 = vpop.f32.mrf.mxu0 }
 0x123   : > { %v545_v12 = vmul.f32 %v832_v1, %v737_v8 }
 0x124   : > { %v739_v17 = vpop.f32.mrf.mxu0 }
 0x125   : > { %v712_v18 = vclamps-f32 %v545_v12, 1.0 }
 0x127   : > { %v557_v19 = vadd.f32 %v712_v18, %v556_v15  ;;  %vm555_vm1 = vcmp.gt.f32.partialorder %v712_v18, %v553_v9 }
 0x129   : > { %v558_v23 = vmul.f32 %v712_v18, %v557_v19 }
 0x12b   : > { %v559_v24 = vsel %vm555_vm1, %v558_v23, %v712_v18 }
 0x12c   : > { %v576_v25 = vsel %vm569_vm2, %v574_v3, %v559_v24 }
 0x12d   : > { %v578_v26 = vmul.f32 30.0, %v576_v25 }
 0x12f   : > { %v579_v27 = vsel %vm577_vm3, %v578_v26, -1e+30 }
 0x130   : > { %581 = vmax.xlane.f32.xlu1 %v579_v27 }
 0x1b9   : > { %v582_v29 = vpop.xlane.xlu1 %581 }
 0x1ba   : > { %v583_v30 = vmax.f32 %v580_v28, %v582_v29 }
 0x1bc   : > { %v584_v31 = vsub.f32 %v580_v28, %v583_v30  ;;  %602 = vst.msk [vmem:[#allocation2] sm:$0xff] %vm600_vm4, %v583_v30  ;;  %591 = vperm.xlu0 %795, %v583_v30  }
 0x1be   : > { %v585_v35 = vmul.f32 1.442695, %v584_v31 }
 0x237   : > { %v592_v32 = vpop.permute.xlu0 %591 }
 0x238   : > { %v594_v21 = vsub.f32 %v579_v27, %v592_v32 }
 0x23a   : > { %v595_v33 = vmul.f32 1.442695, %v594_v21 }
 0x23c   : > { %833 = vpow2.f32 %v595_v33 }
 0x23d   : > { %835 = vpow2.f32 %v585_v35 }
 0x249   : > { %v834_v34 = vpop.eup %833 }
 0x24a   : > { %597 = vadd.xlane.f32.xlu0 %v834_v34  ;;  %v836_v36 = vpop.eup %835 }
 0x24b   : > { %v588_v16 = vmul.f32 %v836_v36, %v587_v37 }
 0x2d2   : > { %606 = sbr.rel (%p714_p8) target bundleno = 958 (0x3be), region = 56 }
 0x2d3   : > { %v598_v38 = vpop.xlane.xlu0 %597 }
 0x2d4   : > { %v599_v39 = vadd.f32 %v598_v38, %v588_v16 }
 0x2d6   : > { %601 = vst.msk [vmem:[#allocation3] sm:$0xff] %vm600_vm4, %v599_v39 }
 0x2d7   : > { %v612_v41 = vld [vmem:[%s1154_s4] sm:$0xff] }
 0x2d8   : > { %v607_v14 = vld [vmem:[#allocation2] sm:$0xff]  ;;  %v613_v44 = vmul.f32 30.0, %v612_v41 }
 0x2dd   : > { %v608_v40 = vld [vmem:[#allocation3] sm:$0xff] }
 0x2de   : > { %837 = vlog2.f32 %v608_v40 }
 0x2eb   : > { %v838_v42 = vpop.eup %837 }
 0x2ec   : > { %v610_v43 = vmul.f32 0.6931472, %v838_v42 }
 0x2ee   : > { %v611_v45 = vadd.f32 %v610_v43, %v607_v14 }
 0x2f0   : > { %v614_v46 = vsub.f32 %v611_v45, %v613_v44 }
 0x2f2   : > { %v615_v47 = vsel %vm600_vm4, %v614_v46, 0.0 }
 0x2f3   : > { %616 = vadd.xlane.f32.xlu0 %v615_v47 }
 0x37c   : > { %v617_v10 = vpop.xlane.xlu0 %616 }
 0x37d   : > { %v618_v48 = vrot.slane %v617_v10, 4 }
 0x37f   : > { %v619_v49 = vadd.f32 %v618_v48, %v617_v10 }
 0x381   : > { %v620_v50 = vrot.slane %v619_v49, 2 }
 0x383   : > { %v621_v51 = vadd.f32 %v620_v50, %v619_v49 }
 0x385   : > { %v622_v52 = vrot.slane %v621_v51, 1 }
 0x387   : > { %v623_v53 = vadd.f32 %v622_v52, %v621_v51 }
 0x389   : > { %741 = vpush %v623_v53 }
 0x3ba   : > { %s742_s9 = spop %741 }
 0x3bb   : > { %s627_s10 = smul.f32 0.125, %s742_s9 }
 0x3bd   : > { %629 = sst [smem:[#allocation8]] %s627_s10 }
 0x3be PF: > { %p754_p1 = scmp.eq.s32.totalorder %s982_s0, 2  ;;  %s924_s11 = smov [#allocation8]  }
 0x3c0   : > { %746 = dma.smem_to_hbm (%p754_p1), %s924_s11, 16, %s1156_s6, [#allocation7]  }
 0x3c1   : > { %898 = dma.done.wait (%p754_p1), [#allocation7], 16  }
 0x3c2   : > { %900 = vsyncadd (%p754_p1), [#allocation7], 4294967280 }
 0x3c3   : > { %643 = sfence }
 0x3c4 PF: > { %p18_p2 = scmp.ge.s32.totalorder %s985_s27, 5   ;;  %s1161_s23 = smov %s907_s24 }
 0x3c5   : > { %s1162_s24 = smov %s911_s25  ;;  %s1163_s25 = smov %s995_s30 }
 0x3c6   : > { %s1164_s26 = smov %s985_s27  ;;  %20 = sbr.rel (!%p18_p2) target bundleno = 6 (0x6), region = 90 }
 0x3cb   :  { %649 = vsyncpa [#allocation6], 1 }
 0x3cc   :  { %651 = vsyncpa [#allocation6 + $0x1], 1 }
 0x3cd   :  { %652 = vsyncpa [#allocation7], 1 }
 0x3ce   :  { %654 = vsyncpa [#allocation7 + $0x1], 1 }

</bundles_post_ra>
